<compile_context>
chip_gen: v7x
topology: tpu7x:2x2x1
jax: 0.10.0
libtpu: 0.0.40
codegen_flags: <defaults>
</compile_context>

<pallas_src>
import functools

import jax
import jax.numpy as jnp
from jax.experimental import pallas as pl
from jax.experimental.pallas import tpu as pltpu


# ----------------------------- Pallas kernel ------------------------------- #

def _steeper_sigmoid_kernel(x_ref, o_ref, *, half_inv_temperature):
    """sigmoid(x / T) == 0.5 * tanh(x * (0.5/T)) + 0.5  (one EUP op / element)."""
    x = x_ref[...].astype(jnp.float32)
    y = 0.5 * jnp.tanh(x * half_inv_temperature) + 0.5
    o_ref[...] = y.astype(o_ref.dtype)


# ------------------------------ wrapper ------------------------------------ #

def _largest_dividing_cols(n, max_cols):
    """Largest multiple of 128 that divides n (capped at max_cols), or None."""
    best = None
    c = 128
    while c <= max_cols:
        if n % c == 0:
            best = c
        c += 128
    return best


def _pick_block_rows(rows, max_block_rows):
    """Row-tile size: full array for tiny inputs, else a multiple of 32 chosen
    so the 1-D grid has >= 2 steps (v7x megacore) and the tile stays small."""
    if rows <= 32:
        return rows                           # single full-array block
    half = (rows // 2) // 32 * 32             # aim for >= 2 grid steps
    return max(32, min(max_block_rows, half if half else 32))


def steeper_sigmoid_pallas(x, temperature=0.1, *, max_cols=1024,
                           tile_bytes=2 * 1024 * 1024):
    """sigmoid(x / temperature) for an arbitrarily shaped array `x`."""
    orig_shape = x.shape
    out_dtype = x.dtype
    n = x.size
    if n == 0:
        return x

    kernel = functools.partial(
        _steeper_sigmoid_kernel,
        half_inv_temperature=float(0.5 / temperature))

    cols = _largest_dividing_cols(n, max_cols)
    if cols is not None:
        # Fast path: pure reshape (no data movement), no padding, no out-slice.
        rows = n // cols
        x2 = x.reshape(rows, cols)
        unpadded = None
    else:
        # Fallback for sizes not divisible by 128: pad the flat tail up to one
        # lane-dense row width (< 512 extra elements) and slice it off after.
        cols = 512
        rows = pl.cdiv(n, cols)
        pad = rows * cols - n
        x2 = jnp.pad(x.reshape(-1), (0, pad)).reshape(rows, cols)
        unpadded = n

    # ~2 MiB tiles sized in f32 terms (conservative for bf16 too).
    max_block_rows = max(32, (tile_bytes // 4) // cols // 32 * 32)
    block_rows = _pick_block_rows(rows, max_block_rows)
    grid = (pl.cdiv(rows, block_rows),)       # ragged last block handled by Pallas

    y2 = pl.pallas_call(
        kernel,
        out_shape=jax.ShapeDtypeStruct((rows, cols), out_dtype),
        grid=grid,
        in_specs=[pl.BlockSpec((block_rows, cols), lambda i: (i, 0))],
        out_specs=pl.BlockSpec((block_rows, cols), lambda i: (i, 0)),
        compiler_params=pltpu.CompilerParams(
            dimension_semantics=("parallel",)),
    )(x2)

    if unpadded is None:
        return y2.reshape(orig_shape)
    return y2.reshape(-1)[:unpadded].reshape(orig_shape)


# --------------------------------- main ------------------------------------ #

if __name__ == "__main__":
    TEMPERATURE = 0.1
    N, C, H, W = 2, 4, 16, 16

    key = jax.random.PRNGKey(0)
    x = jax.random.normal(key, (N, C, H, W), jnp.float32)

    fwd = jax.jit(functools.partial(steeper_sigmoid_pallas,
                                    temperature=TEMPERATURE))
    y = jax.block_until_ready(fwd(x))

    # Reference: torch.sigmoid(x / temperature)
    ref = jax.nn.sigmoid(x / TEMPERATURE)

    assert y.shape == x.shape, y.shape
    assert y.dtype == x.dtype, y.dtype
    assert bool(jnp.all(jnp.isfinite(y)))
    assert bool(jnp.all((y >= 0.0) & (y <= 1.0)))
    err = float(jnp.max(jnp.abs(y - ref)))
    assert err < 1e-5, err

    # bf16 I/O path: half the HBM traffic, f32 compute inside the kernel.
    xb = x.astype(jnp.bfloat16)
    yb = jax.block_until_ready(fwd(xb))
    assert yb.shape == x.shape and yb.dtype == jnp.bfloat16
    assert bool(jnp.allclose(yb.astype(jnp.float32), ref, atol=5e-3))

    print("KERNEL_OK")
</pallas_src>

<mosaic_0001>
module attributes {stable_mosaic.version = 11 : i64} {
  func.func @_steeper_sigmoid_kernel(%arg0: i32, %arg1: memref<2x1024xf32, #tpu.memory_space<vmem>>, %arg2: memref<2x1024xf32, #tpu.memory_space<vmem>>) attributes {dimension_semantics = [#tpu.dimension_semantics<parallel>], iteration_bounds = array<i64: 1>, scalar_prefetch = 0 : i64, scratch_operands = 0 : i64, tpu.core_type = #tpu.core_type<tc>, window_params = [{transform_indices = @transform_0, window_bounds = array<i64: 2, 1024>}, {transform_indices = @transform_1, window_bounds = array<i64: 2, 1024>}]} {
    %c0 = arith.constant 0 : index
    %c0_0 = arith.constant 0 : index
    %0 = vector.load %arg1[%c0, %c0_0] : memref<2x1024xf32, #tpu.memory_space<vmem>>, vector<2x1024xf32>
    %cst = arith.constant 5.000000e+00 : f32
    %1 = vector.broadcast %cst : f32 to vector<2x1024xf32>
    %2 = arith.mulf %0, %1 : vector<2x1024xf32>
    %3 = math.tanh %2 : vector<2x1024xf32>
    %cst_1 = arith.constant 5.000000e-01 : f32
    %4 = vector.broadcast %cst_1 : f32 to vector<2x1024xf32>
    %5 = arith.mulf %4, %3 : vector<2x1024xf32>
    %cst_2 = arith.constant 5.000000e-01 : f32
    %6 = vector.broadcast %cst_2 : f32 to vector<2x1024xf32>
    %7 = arith.addf %5, %6 : vector<2x1024xf32>
    %c0_3 = arith.constant 0 : index
    %c0_4 = arith.constant 0 : index
    %8 = vector.load %arg2[%c0_3, %c0_4] : memref<2x1024xf32, #tpu.memory_space<vmem>>, vector<2x1024xf32>
    tpu.vector_store %arg2[%c0_3, %c0_4], %7 {strides = array<i32>} : memref<2x1024xf32, #tpu.memory_space<vmem>>, vector<2x1024xf32>,
    return
  }
  func.func @transform_0(%arg0: i32) -> (i32, i32) {
    %c0_i32 = arith.constant 0 : i32
    %c0_i32_0 = arith.constant 0 : i32
    return %arg0, %c0_i32 : i32, i32
  }
  func.func @transform_1(%arg0: i32) -> (i32, i32) {
    %c0_i32 = arith.constant 0 : i32
    %c0_i32_0 = arith.constant 0 : i32
    return %arg0, %c0_i32 : i32, i32
  }
}

</mosaic_0001>

<bundles_post_ra>
// kernel: steeper_sigmoid_pallas.1
= control target key start
LH: loop header
LB: loop body
LE: loop exit
PB: predicated region body
PF: predicated region fallthrough
CT: control target
= control target key end

     0   :  { %s50_s0 = inlined_call_operand.vmem [shape: f32[2,1024], index: 0, kind: input, shape index: {}]   ;;  %s51_s1 = inlined_call_operand.vmem [shape: f32[2,1024], index: 1, kind: output, shape index: {}]  }
   0x1   :  { %v8_v0 = vld [vmem:[%s50_s0] sm:$0xff]  ;;  %v9_v1 = vld [vmem:[%s50_s0 + $0x8] sm:$0xff] }
   0x2   :  { %v10_v2 = vmul.f32 5.0, %v8_v0  ;;  %v11_v3 = vmul.f32 5.0, %v9_v1 }
   0x4   :  { %24 = vtanh.f32 %v10_v2 }
   0x5   :  { %26 = vtanh.f32 %v11_v3 }
   0xe   :  { %v25_v4 = vpop.eup %24 }
   0xf   :  { %v27_v5 = vpop.eup %26  ;;  %v14_v6 = vmul.f32 0.5, %v25_v4 }
  0x10   :  { %v15_v7 = vmul.f32 0.5, %v27_v5 }
  0x11   :  { %v16_v8 = vadd.f32 0.5, %v14_v6 }
  0x12   :  { %v17_v9 = vadd.f32 0.5, %v15_v7 }
  0x13   :  { %18 = vst [vmem:[%s51_s1] sm:$0xff] %v16_v8 }
  0x14   :  { %19 = vst [vmem:[%s51_s1 + $0x8] sm:$0xff] %v17_v9 }

</bundles_post_ra>
